<compile_context>
chip_gen: v6e
topology: v6e:2x2x1
jax: 0.10.0
libtpu: 0.0.40
codegen_flags: <defaults>
</compile_context>

<pallas_src>
import jax
import jax.numpy as jnp
from jax.experimental import pallas as pl
from jax.experimental.pallas import tpu as pltpu

BN_EPS = 1e-5
L2_EPS = 1e-12
LANE = 128
SUBLANE = 8


def _round_up(n, m):
    return (n + m - 1) // m * m


def _choose_tile(n, requested):
    """Row-tile size: multiple of 8, >=2 grid steps when the batch allows (v7x)."""
    t = min(requested, _round_up(n, SUBLANE))
    if t >= n and n > SUBLANE:
        # Batch fits in one tile but is splittable: force >=2 steps so both
        # v7x TensorCores get work (no effect on v5e/v6e, 1 TC).
        t = _round_up((n + 1) // 2, SUBLANE)
    return max(t, SUBLANE)


def mapper_kernel(x_ref, w1_ref, w2_ref, b1_ref, b2_ref, o_ref):
    """One row-tile of the fused forward pass.

    x_ref  : (TILE_N, F)     f32   (unpadded feature dim; cast to bf16 here)
    w1_ref : (F, H_pad)      bf16  (BatchNorm(eval) + fc1 bias folded in)
    w2_ref : (H_pad, O)      bf16
    b1_ref : (1, H_pad)      f32   (fused fc1/BN bias)
    b2_ref : (1, O)          f32
    o_ref  : (TILE_N, O)     f32
    """
    x = x_ref[...].astype(jnp.bfloat16)              # VPU cast, f32 HBM read

    # fc1 + BatchNorm1d(eval) [folded]: bf16 MXU operands, f32 accumulation.
    h = jnp.dot(x, w1_ref[...], preferred_element_type=jnp.float32) + b1_ref[...]
    # ReLU (Dropout(p=0.5) is identity in eval mode).
    h = jnp.maximum(h, 0.0)

    # fc2: cast activations to bf16 right at the dot; elementwise stays f32.
    y = jnp.dot(h.astype(jnp.bfloat16), w2_ref[...],
                preferred_element_type=jnp.float32) + b2_ref[...]

    # F.normalize(y, p=2, dim=1): y * rsqrt(max(||y||^2, eps^2)).
    # (Clamp is on the squared norm; equivalent to torch for non-degenerate rows.)
    sumsq = jnp.sum(y * y, axis=-1, keepdims=True)
    inv = jax.lax.rsqrt(jnp.maximum(sumsq, L2_EPS * L2_EPS))
    o_ref[...] = y * inv


def prepare_params(params):
    """One-time, N-independent weight prep: fold BN(eval)+bias into fc1,
    pad the hidden dim to 128 lanes (weights are VMEM-resident, so this is
    free per call) and cast the matmul operands to bf16."""
    w1, b1, gamma, beta, run_mean, run_var, w2, b2 = params
    F, H = w1.shape
    O = w2.shape[1]
    H_pad = _round_up(H, LANE)

    scale = gamma * jax.lax.rsqrt(run_var + BN_EPS)           # (1, H)
    w1f = w1 * scale                                          # (F, H)
    b1f = (b1 - run_mean) * scale + beta                      # (1, H)

    w1_p = jnp.pad(w1f, ((0, 0), (0, H_pad - H))).astype(jnp.bfloat16)
    w2_p = jnp.pad(w2, ((0, H_pad - H), (0, 0))).astype(jnp.bfloat16)
    b1_p = jnp.pad(b1f, ((0, 0), (0, H_pad - H)))             # f32
    b2_p = b2                                                 # (1, O) f32

    return {"w1": w1_p, "w2": w2_p, "b1": b1_p, "b2": b2_p,
            "feat": F, "hidden_pad": H_pad, "out": O}


def mapper_forward(x, prepped, *, tile_n=1024):
    N, F = x.shape
    assert F == prepped["feat"]
    H_pad = prepped["hidden_pad"]
    O = prepped["out"]

    t = _choose_tile(N, tile_n)
    N_pad = _round_up(N, t)
    x_in = x if N_pad == N else jnp.pad(x, ((0, N_pad - N), (0, 0)))

    grid = (N_pad // t,)

    # VMEM budget: resident weights + double-buffered x/out tiles + f32/bf16
    # intermediates (h, y) + compiler scratch margin.  Keep under v7x's 64 MiB/TC.
    weight_bytes = (F * H_pad + H_pad * O) * 2 + (H_pad + O) * 4
    io_bytes = 2 * t * (F + O) * 4                 # double-buffered f32 x / out tiles
    interm_bytes = t * (H_pad * (4 + 2) + O * 4)   # h f32 + h bf16 + y f32
    vmem_limit = int(min(weight_bytes + io_bytes + interm_bytes + (8 << 20), 48 << 20))

    out = pl.pallas_call(
        mapper_kernel,
        out_shape=jax.ShapeDtypeStruct((N_pad, O), jnp.float32),
        grid=grid,
        in_specs=[
            pl.BlockSpec((t, F), lambda i: (i, 0)),        # x: row-tiled, unpadded F
            pl.BlockSpec((F, H_pad), lambda i: (0, 0)),    # w1: resident
            pl.BlockSpec((H_pad, O), lambda i: (0, 0)),    # w2: resident
            pl.BlockSpec((1, H_pad), lambda i: (0, 0)),    # b1 (fused): resident
            pl.BlockSpec((1, O), lambda i: (0, 0)),        # b2: resident
        ],
        out_specs=pl.BlockSpec((t, O), lambda i: (i, 0)),  # narrow output (O unpadded)
        compiler_params=pltpu.CompilerParams(
            dimension_semantics=("parallel",),
            vmem_limit_bytes=vmem_limit,
        ),
    )(x_in, prepped["w1"], prepped["w2"], prepped["b1"], prepped["b2"])

    return out if N_pad == N else out[:N]


def reference_forward(x, params):
    """Pure f32 JAX reference of the PyTorch module (eval mode)."""
    w1, b1, gamma, beta, run_mean, run_var, w2, b2 = params
    h = x @ w1 + b1
    h = (h - run_mean) / jnp.sqrt(run_var + BN_EPS) * gamma + beta
    h = jnp.maximum(h, 0.0)
    y = h @ w2 + b2
    nrm = jnp.sqrt(jnp.sum(y * y, axis=-1, keepdims=True))
    return y / jnp.maximum(nrm, L2_EPS)


def init_params(key, feat_dim, hidden_dim, out_dim):
    k1, k2, k3, k4, k5, k6 = jax.random.split(key, 6)
    w1 = jax.random.normal(k1, (feat_dim, hidden_dim), jnp.float32) / jnp.sqrt(feat_dim)
    b1 = jax.random.normal(k2, (1, hidden_dim), jnp.float32) * 0.01
    gamma = 1.0 + 0.1 * jax.random.normal(k3, (1, hidden_dim), jnp.float32)
    beta = 0.1 * jax.random.normal(k4, (1, hidden_dim), jnp.float32)
    run_mean = 0.1 * jax.random.normal(k5, (1, hidden_dim), jnp.float32)
    run_var = jnp.abs(1.0 + 0.1 * jax.random.normal(k6, (1, hidden_dim), jnp.float32))
    k7, k8 = jax.random.split(k1)
    w2 = jax.random.normal(k7, (hidden_dim, out_dim), jnp.float32) / jnp.sqrt(hidden_dim)
    b2 = jax.random.normal(k8, (1, out_dim), jnp.float32) * 0.01
    return (w1, b1, gamma, beta, run_mean, run_var, w2, b2)


if __name__ == "__main__":
    N, FEAT, HIDDEN, OUT = 8, 32, 64, 16

    key = jax.random.PRNGKey(0)
    kx, kp = jax.random.split(key)
    x = jax.random.normal(kx, (N, FEAT), jnp.float32)
    params = init_params(kp, FEAT, HIDDEN, OUT)

    prepped = prepare_params(params)          # one-time weight prep (BN fold, pad, bf16)
    out = mapper_forward(x, prepped)
    out = jax.block_until_ready(out)

    ref = reference_forward(x, params)
    assert out.shape == (N, OUT)
    # bf16 MXU operands -> loosen tolerance vs. the f32 reference.
    assert jnp.allclose(out, ref, atol=2e-2, rtol=2e-2), "mismatch vs reference"
    # L2-normalized rows should have (near-)unit norm.
    assert jnp.allclose(jnp.linalg.norm(out, axis=1), 1.0, atol=1e-3)

    print("KERNEL_OK")
</pallas_src>

<mosaic_0001>
module attributes {stable_mosaic.version = 11 : i64} {
  func.func @mapper_kernel(%arg0: i32, %arg1: memref<8x32xf32, #tpu.memory_space<vmem>>, %arg2: memref<32x128xbf16, #tpu.memory_space<vmem>>, %arg3: memref<128x16xbf16, #tpu.memory_space<vmem>>, %arg4: memref<1x128xf32, #tpu.memory_space<vmem>>, %arg5: memref<1x16xf32, #tpu.memory_space<vmem>>, %arg6: memref<8x16xf32, #tpu.memory_space<vmem>>) attributes {dimension_semantics = [#tpu.dimension_semantics<parallel>], iteration_bounds = array<i64: 1>, scalar_prefetch = 0 : i64, scratch_operands = 0 : i64, tpu.core_type = #tpu.core_type<tc>, window_params = [{transform_indices = @transform_0, window_bounds = array<i64: 8, 32>}, {pipeline_mode = #tpu.pipeline_mode<synchronous>, transform_indices = @transform_1, window_bounds = array<i64: 32, 128>}, {pipeline_mode = #tpu.pipeline_mode<synchronous>, transform_indices = @transform_2, window_bounds = array<i64: 128, 16>}, {pipeline_mode = #tpu.pipeline_mode<synchronous>, transform_indices = @transform_3, window_bounds = array<i64: 1, 128>}, {pipeline_mode = #tpu.pipeline_mode<synchronous>, transform_indices = @transform_4, window_bounds = array<i64: 1, 16>}, {transform_indices = @transform_5, window_bounds = array<i64: 8, 16>}]} {
    %c0 = arith.constant 0 : index
    %c0_0 = arith.constant 0 : index
    %0 = vector.load %arg1[%c0, %c0_0] : memref<8x32xf32, #tpu.memory_space<vmem>>, vector<8x32xf32>
    %1 = arith.truncf %0 : vector<8x32xf32> to vector<8x32xbf16>
    %c0_1 = arith.constant 0 : index
    %c0_2 = arith.constant 0 : index
    %2 = vector.load %arg2[%c0_1, %c0_2] : memref<32x128xbf16, #tpu.memory_space<vmem>>, vector<32x128xbf16>
    %cst = arith.constant dense<0.000000e+00> : vector<8x128xf32>
    %3 = tpu.matmul %1, %2, %cst {dimension_numbers = #tpu.dot_dimension_numbers<[1], [0], [0], [1], [0, 0, 1, 1], [], []>} : vector<8x32xbf16>, vector<32x128xbf16>, vector<8x128xf32> -> vector<8x128xf32>
    %c0_3 = arith.constant 0 : index
    %c0_4 = arith.constant 0 : index
    %4 = vector.load %arg4[%c0_3, %c0_4] : memref<1x128xf32, #tpu.memory_space<vmem>>, vector<1x128xf32>
    %5 = vector.broadcast %4 : vector<1x128xf32> to vector<8x128xf32>
    %6 = arith.addf %3, %5 : vector<8x128xf32>
    %cst_5 = arith.constant 0.000000e+00 : f32
    %7 = vector.broadcast %cst_5 : f32 to vector<8x128xf32>
    %8 = arith.maximumf %6, %7 : vector<8x128xf32>
    %9 = arith.truncf %8 : vector<8x128xf32> to vector<8x128xbf16>
    %c0_6 = arith.constant 0 : index
    %c0_7 = arith.constant 0 : index
    %10 = vector.load %arg3[%c0_6, %c0_7] : memref<128x16xbf16, #tpu.memory_space<vmem>>, vector<128x16xbf16>
    %cst_8 = arith.constant dense<0.000000e+00> : vector<8x16xf32>
    %11 = tpu.matmul %9, %10, %cst_8 {dimension_numbers = #tpu.dot_dimension_numbers<[1], [0], [0], [1], [0, 0, 1, 1], [], []>} : vector<8x128xbf16>, vector<128x16xbf16>, vector<8x16xf32> -> vector<8x16xf32>
    %c0_9 = arith.constant 0 : index
    %c0_10 = arith.constant 0 : index
    %12 = vector.load %arg5[%c0_9, %c0_10] : memref<1x16xf32, #tpu.memory_space<vmem>>, vector<1x16xf32>
    %13 = vector.broadcast %12 : vector<1x16xf32> to vector<8x16xf32>
    %14 = arith.addf %11, %13 : vector<8x16xf32>
    %15 = arith.mulf %14, %14 : vector<8x16xf32>
    %cst_11 = arith.constant dense<0.000000e+00> : vector<8xf32>
    %16 = vector.multi_reduction <add>, %15, %cst_11 [1] : vector<8x16xf32> to vector<8xf32>
    %17 = vector.shape_cast %16 : vector<8xf32> to vector<8x1xf32>
    %cst_12 = arith.constant 1.000000e-24 : f32
    %18 = vector.broadcast %cst_12 : f32 to vector<8x1xf32>
    %19 = arith.maximumf %17, %18 : vector<8x1xf32>
    %20 = math.rsqrt %19 : vector<8x1xf32>
    %21 = vector.broadcast %20 : vector<8x1xf32> to vector<8x16xf32>
    %22 = arith.mulf %14, %21 : vector<8x16xf32>
    %c0_13 = arith.constant 0 : index
    %c0_14 = arith.constant 0 : index
    %23 = vector.load %arg6[%c0_13, %c0_14] : memref<8x16xf32, #tpu.memory_space<vmem>>, vector<8x16xf32>
    tpu.vector_store %arg6[%c0_13, %c0_14], %22 {strides = array<i32>} : memref<8x16xf32, #tpu.memory_space<vmem>>, vector<8x16xf32>,
    return
  }
  func.func @transform_0(%arg0: i32) -> (i32, i32) {
    %c0_i32 = arith.constant 0 : i32
    %c0_i32_0 = arith.constant 0 : i32
    return %arg0, %c0_i32 : i32, i32
  }
  func.func @transform_1(%arg0: i32) -> (i32, i32) {
    %c0_i32 = arith.constant 0 : i32
    %c0_i32_0 = arith.constant 0 : i32
    %c0_i32_1 = arith.constant 0 : i32
    return %c0_i32, %c0_i32_0 : i32, i32
  }
  func.func @transform_2(%arg0: i32) -> (i32, i32) {
    %c0_i32 = arith.constant 0 : i32
    %c0_i32_0 = arith.constant 0 : i32
    %c0_i32_1 = arith.constant 0 : i32
    return %c0_i32, %c0_i32_0 : i32, i32
  }
  func.func @transform_3(%arg0: i32) -> (i32, i32) {
    %c0_i32 = arith.constant 0 : i32
    %c0_i32_0 = arith.constant 0 : i32
    %c0_i32_1 = arith.constant 0 : i32
    return %c0_i32, %c0_i32_0 : i32, i32
  }
  func.func @transform_4(%arg0: i32) -> (i32, i32) {
    %c0_i32 = arith.constant 0 : i32
    %c0_i32_0 = arith.constant 0 : i32
    %c0_i32_1 = arith.constant 0 : i32
    return %c0_i32, %c0_i32_0 : i32, i32
  }
  func.func @transform_5(%arg0: i32) -> (i32, i32) {
    %c0_i32 = arith.constant 0 : i32
    %c0_i32_0 = arith.constant 0 : i32
    return %arg0, %c0_i32 : i32, i32
  }
}

</mosaic_0001>

<bundles_post_ra>
// kernel: tpu_custom_call.1
= control target key start
LH: loop header
LB: loop body
LE: loop exit
PB: predicated region body
PF: predicated region fallthrough
CT: control target
= control target key end

     0   :  { %v317_v1 = vmov 0.0   ;;  %vm318_vm0 = vmmov 0   ;;  %vm47_vm1 = vcmask 261120   ;;  %s392_s0 = inlined_call_operand.vmem [shape: f32[8,32], index: 0, kind: input, shape index: {}]   ;;  %s393_s1 = inlined_call_operand.vmem [shape: bf16[32,128], index: 1, kind: input, shape index: {}]   ;;  %s394_s2 = inlined_call_operand.vmem [shape: bf16[128,16], index: 2, kind: input, shape index: {}]   ;;  %s395_s3 = inlined_call_operand.vmem [shape: f32[1,128], index: 3, kind: input, shape index: {}]   ;;  %s396_s4 = inlined_call_operand.vmem [shape: f32[1,16], index: 4, kind: input, shape index: {}]   ;;  %s397_s5 = inlined_call_operand.hbm [shape: f32[8,16], index: 5, kind: output, shape index: {}]  }
   0x1   :  { %v283_v0 = vld [vmem:[%s393_s1 + $0x8] sm:$0xff]   ;;  %252 = vmatprep.subr.bf16.mxu0 %v317_v1  ;;  %v284_v2 = vld [vmem:[%s393_s1] sm:$0xff]   ;;  %260 = vmatprep.subr.bf16.mxu1 %v317_v1  ;;  %v285_v4 = vld [vmem:[%s394_s2 + $0x38] sm:$0xff]  }
   0x2   :  { %253 = vmatpush3.bf16.msra.mxu0 %v283_v0  ;;  %256 = vmatprep.mubr.msk.bf16.mxu0 %vm318_vm0, %v317_v1  ;;  %v22_v3 = vld [vmem:[%s392_s0] sm:$0xff]  ;;  %v286_v6 = vld [vmem:[%s394_s2 + $0x30] sm:$0xff]   ;;  %v287_v7 = vld [vmem:[%s394_s2 + $0x28] sm:$0xff]  }
   0x3   :  { %254 = vmatprep.subr.bf16.mxu0 %v317_v1  ;;  %276 = vmatprep.mubr.msk.bf16.mxu1 %vm318_vm0, %v317_v1  ;;  %v23_v5 = vpack.c.bf16 %v22_v3, %v22_v3 }
   0x4   :  { %261 = vmatpush3.bf16.msra.mxu1 %v285_v4 }
   0x5   :  { %262 = vmatprep.subr.bf16.mxu1 %v317_v1 }
   0x6   :  { %255 = vmatpush3.bf16.msra.mxu0 %v284_v2 }
   0x8   :  { %263 = vmatpush3.bf16.msra.mxu1 %v286_v6 }
   0x9   :  { %257 = vmatmul.mubr.msk.bf16.vlgmr.msra.gmra.mxu0 %vm47_vm1, %v23_v5  ;;  %264 = vmatprep.subr.bf16.mxu1 %v317_v1 }
   0xa   :  { %10 = vsyncpa [#allocation3], 0  ;;  %v288_v8 = vld [vmem:[%s394_s2 + $0x20] sm:$0xff]   ;;  %v289_v9 = vld [vmem:[%s394_s2 + $0x18] sm:$0xff]   ;;  %vm205_vm2 = vcmask 130048  }
   0xb   :  { %v290_v10 = vld [vmem:[%s394_s2 + $0x10] sm:$0xff]   ;;  %v291_v11 = vld [vmem:[%s394_s2 + $0x8] sm:$0xff]   ;;  %v292_v12 = vld [vmem:[%s394_s2] sm:$0xff]   ;;  %s319_s2 = smov [#allocation2]  }
   0xc   :  { %265 = vmatpush3.bf16.msra.mxu1 %v287_v7  ;;  %v227_v13 = vld [vmem:[%s395_s3] ss:$0 sm:$0xff]  ;;  %s219_s3 = sshll.u32 %s319_s2, 4  ;;  %s220_s3 = int_to_ptr.vmem [resolvable:$true] %s219_s3 }
   0xd   :  { %266 = vmatprep.subr.bf16.mxu1 %v317_v1  ;;  %v231_v21 = vld [vmem:[%s396_s4] ss:$0 sm:$0xff]  ;;  %s295_s17 = scalar_lea.vmem %s220_s3, 128  ;;  %p300_p1 = scmp.lt.s32.totalorder %s220_s3, %s220_s3 }
   0xe   :  { %p296_p0 = scmp.ne.s32.totalorder %s220_s3, %s295_s17  ;;  %p301_p2 = scmp.lt.s32.totalorder %s295_s17, %s295_s17 }
  0x10   :  { %267 = vmatpush3.bf16.msra.mxu1 %v288_v8  ;;  %p302_p3 = por %p301_p2, %p300_p1 }
  0x11   :  { %268 = vmatprep.subr.bf16.mxu1 %v317_v1 }
  0x12   :  { %p303_p4 = pnand %p302_p3, %p296_p0 }
  0x14   :  { %269 = vmatpush3.bf16.msra.mxu1 %v289_v9 }
  0x15   :  { %270 = vmatprep.subr.bf16.mxu1 %v317_v1 }
  0x18   :  { %271 = vmatpush3.bf16.msra.mxu1 %v290_v10 }
  0x19   :  { %272 = vmatprep.subr.bf16.mxu1 %v317_v1 }
  0x1c   :  { %273 = vmatpush3.bf16.msra.mxu1 %v291_v11 }
  0x1d   :  { %274 = vmatprep.subr.bf16.mxu1 %v317_v1 }
  0x20   :  { %275 = vmatpush3.bf16.msra.mxu1 %v292_v12 }
  0xc9   :  { %v85_v14 = vpop.f32.mrf.mxu0 }
  0xca   :  { %v86_v15 = vadd.f32 %v227_v13, %v85_v14 }
  0xcb   :  { %v258_v16 = vpop.f32.mrf.mxu0 }
  0xcc   :  { %v91_v17 = vmax.f32 %v86_v15, 0.0 }
  0xcd   :  { %v88_v18 = vpop.f32.mrf.mxu0 }
  0xce   :  { %v92_v19 = vpack.c.bf16 %v91_v17, %v91_v17 }
  0xcf   :  { %v259_v20 = vpop.f32.mrf.mxu0 }
  0xd0   :  { %277 = vmatmul.mubr.bf16.vlgmr.msra.gmra.mxu1 %v92_v19 }
 0x190   :  { %v198_v22 = vpop.f32.mrf.mxu1 }
 0x191   :  { %v199_v23 = vadd.f32 %v231_v21, %v198_v22 }
 0x192   :  { %v278_v24 = vpop.f32.mrf.mxu1 }
 0x193   :  { %v204_v25 = vmul.f32 %v199_v23, %v199_v23 }
 0x194   :  { %v201_v26 = vpop.f32.mrf.mxu1 }
 0x195   :  { %v206_v27 = vsel %vm205_vm2, %v204_v25, 0.0 }
 0x196   :  { %v279_v28 = vpop.f32.mrf.mxu1  ;;  %207 = vadd.xlane.f32.xlu0 %v206_v27 }
 0x21f   :  { %v208_v29 = vpop.xlane.xlu0 %207 }
 0x220   :  { %v209_v30 = vmax.f32 %v208_v29, 1e-24 }
 0x222   :  { %293 = vrsqrt.f32 %v209_v30 }
 0x22f   :  { %v294_v31 = vpop.eup %293 }
 0x230   :  { %v211_v32 = vmul.f32 %v294_v31, %v199_v23 }
 0x232   :  { %212 = vst.msk [vmem:[#allocation2] sm:$0xff] %vm205_vm2, %v211_v32 }
 0x233   :  { %306 = shalt.err (!%p303_p4)
}
 0x234   :  { %222 = dma.vmem_to_hbm [thread:$0]  %s220_s3, 128, %s397_s5, [#allocation3]  }
 0x235   :  { %315 = dma.done.wait [#allocation3], 128  }
 0x236   :  { %316 = vsyncadd [#allocation3], 4294967168 }
 0x237   :  { %226 = vsyncpa [#allocation3], 1 }

</bundles_post_ra>
